<compile_context>
chip_gen: v7x
topology: tpu7x:2x2x1
jax: 0.10.0
libtpu: 0.0.40
codegen_flags: <defaults>
</compile_context>

<pallas_src>
from typing import Tuple, Union

import jax
import jax.numpy as jnp
from jax.experimental import pallas as pl
from jax.experimental.pallas import tpu as pltpu


def _hbm_copy_kernel(x_hbm_ref, o_hbm_ref, sem):
    # One HBM->HBM DMA for the whole array: no VMEM staging, no vld/vst slots,
    # just the DMA engine running at memory bandwidth.
    cp = pltpu.make_async_copy(x_hbm_ref, o_hbm_ref, sem)
    cp.start()
    cp.wait()


def extract_hidden_state_pallas(hidden: jax.Array) -> jax.Array:
    """Materialize `hidden` via a direct HBM->HBM DMA copy (any shape / dtype)."""
    return pl.pallas_call(
        _hbm_copy_kernel,
        out_shape=jax.ShapeDtypeStruct(hidden.shape, hidden.dtype),
        in_specs=[pl.BlockSpec(memory_space=pl.ANY)],   # leave source in HBM
        out_specs=pl.BlockSpec(memory_space=pl.ANY),    # write destination in HBM
        scratch_shapes=[pltpu.SemaphoreType.DMA(())],
    )(hidden)


def process_hook_args(
    model,
    inp: Union[jax.Array, Tuple[jax.Array, ...]],
    out: Union[jax.Array, Tuple[jax.Array, ...]],
):
    """JAX equivalent of the PyTorch process_hook_args helper (host-side glue)."""
    anchor_hidden_state = out[0] if isinstance(out, tuple) else out
    query = anchor_hidden_state
    return (query, out)


class ExtractHiddenStateHook:
    """Extract hidden state hook for CALM (JAX / Pallas version).

    By default the hidden state is kept by reference (zero-cost; JAX arrays are
    immutable, so this matches the PyTorch `self.hidden_state = hidden`
    semantics exactly). Pass materialize=True to force an explicit HBM->HBM
    DMA copy through the Pallas kernel.
    """

    def __init__(self, materialize: bool = False):
        self.hidden_state = None
        self._materialize = materialize

    def __call__(self, *hook_args):
        return self.forward(*hook_args)

    def forward(self, *hook_args):
        hidden_state, out = process_hook_args(*hook_args)
        if self._materialize:
            # Hot path only when an explicit copy is requested: HBM->HBM DMA.
            self.hidden_state = extract_hidden_state_pallas(hidden_state)
        else:
            # Zero HBM traffic: reference assignment is semantically equivalent.
            self.hidden_state = hidden_state
        return out


if __name__ == "__main__":
    key = jax.random.PRNGKey(0)
    k1, k2 = jax.random.split(key)

    # Small shapes implied by the hook: a transformer block output
    # (batch=2, seq=8, hidden=32) plus an auxiliary tensor in the tuple.
    batch, seq, hidden = 2, 8, 32
    hidden_state = jax.random.normal(k1, (batch, seq, hidden), dtype=jnp.float32)
    aux = jax.random.normal(k2, (batch, seq, hidden), dtype=jnp.float32)
    out_tuple = (hidden_state, aux)

    # Case 1: default zero-copy path (reference semantics, no kernel launch).
    hook_ref = ExtractHiddenStateHook()
    returned = hook_ref(None, hidden_state, out_tuple)
    assert returned is out_tuple
    assert hook_ref.hidden_state is hidden_state

    # Case 2: explicit materialization through the Pallas HBM->HBM DMA kernel,
    # with the hooked layer returning a tuple.
    hook_mat = ExtractHiddenStateHook(materialize=True)
    returned2 = hook_mat(None, hidden_state, out_tuple)
    jax.block_until_ready(hook_mat.hidden_state)
    assert returned2 is out_tuple
    assert jnp.allclose(hook_mat.hidden_state, hidden_state)

    # Case 3: materialization with the hooked layer returning a plain tensor.
    returned3 = hook_mat(None, hidden_state, hidden_state)
    jax.block_until_ready(hook_mat.hidden_state)
    assert returned3 is hidden_state
    assert jnp.allclose(hook_mat.hidden_state, hidden_state)

    print("KERNEL_OK")
</pallas_src>

<mosaic_0001>
module attributes {stable_mosaic.version = 11 : i64} {
  func.func @_hbm_copy_kernel(%arg0: memref<2x8x32xf32, #tpu.memory_space<any>>, %arg1: memref<2x8x32xf32, #tpu.memory_space<any>>, %arg2: memref<!tpu.dma_semaphore, #tpu.memory_space<semaphore_mem>>) attributes {dimension_semantics = [], scalar_prefetch = 0 : i64, scratch_operands = 1 : i64, tpu.core_type = #tpu.core_type<tc>} {
    tpu.enqueue_dma source(%arg0 : memref<2x8x32xf32, #tpu.memory_space<any>>) target(%arg1 : memref<2x8x32xf32, #tpu.memory_space<any>>) target_semaphore(%arg2 : memref<!tpu.dma_semaphore, #tpu.memory_space<semaphore_mem>>)
    tpu.wait_dma2 semaphore(%arg2 : memref<!tpu.dma_semaphore, #tpu.memory_space<semaphore_mem>>) src(%arg0 : memref<2x8x32xf32, #tpu.memory_space<any>>) dst(%arg1 : memref<2x8x32xf32, #tpu.memory_space<any>>)
    return
  }
}

</mosaic_0001>

<bundles_post_ra>
// kernel: tpu_custom_call.1
= control target key start
LH: loop header
LB: loop body
LE: loop exit
PB: predicated region body
PF: predicated region fallthrough
CT: control target
= control target key end

     0   :  { %s35_s6 = smov [#allocation2]   ;;  %s36_s7 = smov [#allocation3]   ;;  %s54_s0 = inlined_call_operand.hbm [shape: f32[2,8,32], index: 0, kind: input, shape index: {}]   ;;  %s55_s1 = inlined_call_operand.hbm [shape: f32[2,8,32], index: 1, kind: output, shape index: {}]  }
   0x1   :  { %s37_s8 = smov 0  }
   0x2   :  { %18 = dma.general %s54_s0, 256, %s55_s1, %s35_s6, %s36_s7, [#allocation4], %s37_s8, 0  }
   0x3   :  { %33 = dma.done.wait [#allocation2], 256 }
   0x4   :  { %34 = vsyncadd [#allocation2], 4294967040 }
   0x5   :  { %23 = vsyncmov [#allocation2] }
   0x8   :  { %s24_s13 = vpop.sfrf %23 }
   0x9   :  { %p29_p0 = scmp.ne.s32.totalorder %s24_s13, 0 }
   0xb   :  { %28 = shalt.err (%p29_p0)  }

</bundles_post_ra>
